<compile_context>
chip_gen: v7x
topology: tpu7x:2x2x1
jax: 0.10.0
libtpu: 0.0.40
codegen_flags: <defaults>
</compile_context>

<pallas_src>
import jax
import jax.numpy as jnp
from jax.experimental import pallas as pl
from jax.experimental.pallas import tpu as pltpu


def _round_up(x: int, m: int) -> int:
    return (x + m - 1) // m * m


def linear_fm_kernel(prod_ref, bias_ref, out_ref):
    """prod_ref: [F, TB] f32 (VMEM); bias_ref: [1,1] f32 (SMEM); out_ref: [1, TB]."""
    # Reduce over F (sublane axis, XLU) -> lane-dense [1, TB]; add scalar bias from SMEM.
    out_ref[...] = jnp.sum(prod_ref[...], axis=0, keepdims=True) + bias_ref[0, 0]


def linear_forward(ids, values, weight, bias, *, tb=65536):
    """ids: [B,F] int, values: [B,F] f32, weight: [NFEAT] (or [NFEAT,1]) f32, bias: [1] f32.

    Returns [B] f32: sum_f(weight[ids] * values) + bias.
    """
    B, F = ids.shape
    w = weight.reshape(-1).astype(jnp.float32)                       # [NFEAT]

    # Fused XLA gather + multiply, then one transpose -> a single lane-dense [F, B]
    # stream for the kernel (halves kernel HBM reads vs streaming weights & values).
    # TODO(synk): for small NFEAT an in-kernel gather against a VMEM-resident table
    # would remove another HBM pass, but arbitrary-index table gather has no robust
    # Mosaic lowering, so the gather stays in XLA.
    # TODO(synk): streaming the fused product as bf16 (upcast in-kernel) would halve
    # kernel HBM bytes, but changes numerics vs the f32 reference, so f32 is kept.
    gathered = jnp.take(w, ids.astype(jnp.int32), axis=0)            # [B, F] f32
    prod_t = (gathered * values.astype(jnp.float32)).T               # [F, B] f32

    # Lane tiling: tb is a multiple of 128, large enough to amortize per-step
    # overhead, but capped so that large batches split into >=2 tiles (v7x has 2 TCs).
    b128 = _round_up(B, 128)
    tb_cap = b128 if b128 <= 128 else _round_up(pl.cdiv(B, 2), 128)
    tb = max(128, min(_round_up(tb, 128), tb_cap))

    # Pad only the single fused stream, and only up to the next lane multiple. The
    # last grid block may still over-read past b128; those lanes are never reduced
    # across and are discarded by the [:B] slice below.
    if b128 != B:
        prod_t = jnp.pad(prod_t, ((0, 0), (0, b128 - B)))

    grid = (pl.cdiv(b128, tb),)

    bias2d = bias.reshape(1, 1).astype(jnp.float32)

    # VMEM budget: double-buffered input tile + double-buffered output tile + headroom.
    # Clamp to <=48 MiB (v7x VMEM is 64 MiB physical); floor at 8 MiB so large tiles
    # don't trip v5e's 16 MiB scoped default.
    tile_bytes = F * tb * 4
    vmem_limit = 2 * tile_bytes + 2 * tb * 4 + (4 << 20)
    vmem_limit = max(8 << 20, min(48 << 20, vmem_limit))

    out = pl.pallas_call(
        linear_fm_kernel,
        out_shape=jax.ShapeDtypeStruct((1, b128), jnp.float32),
        grid=grid,
        in_specs=[
            pl.BlockSpec((F, tb), lambda i: (0, i)),                 # fused w*v stream
            pl.BlockSpec(memory_space=pltpu.MemorySpace.SMEM),       # bias scalar
        ],
        out_specs=pl.BlockSpec((1, tb), lambda i: (0, i)),           # lane-dense output
        compiler_params=pltpu.CompilerParams(
            dimension_semantics=("parallel",),   # shards batch tiles across TCs on v7x
            vmem_limit_bytes=vmem_limit,
        ),
    )(prod_t, bias2d)

    return out[0, :B]


if __name__ == "__main__":
    B, F, NFEAT = 8, 16, 32

    key = jax.random.PRNGKey(0)
    k_ids, k_vals, k_w = jax.random.split(key, 3)

    ids = jax.random.randint(k_ids, (B, F), 0, NFEAT, dtype=jnp.int32)
    values = jax.random.normal(k_vals, (B, F), dtype=jnp.float32)

    # Deterministic parameter init: nn.Embedding(nfeat, 1) ~ N(0,1); bias = zeros.
    weight = jax.random.normal(k_w, (NFEAT,), dtype=jnp.float32)
    bias = jnp.zeros((1,), dtype=jnp.float32)

    out = jax.block_until_ready(linear_forward(ids, values, weight, bias))

    # Pure-JAX reference check.
    ref = jnp.sum(weight[ids] * values, axis=1) + bias[0]
    assert out.shape == (B,)
    assert jnp.allclose(out, ref, atol=1e-5, rtol=1e-5)

    print("KERNEL_OK")
</pallas_src>

<mosaic_0001>
module attributes {stable_mosaic.version = 11 : i64} {
  func.func @linear_fm_kernel(%arg0: i32, %arg1: memref<16x128xf32, #tpu.memory_space<vmem>>, %arg2: memref<1x1xf32, #tpu.memory_space<smem>>, %arg3: memref<1x128xf32, #tpu.memory_space<vmem>>) attributes {dimension_semantics = [#tpu.dimension_semantics<parallel>], iteration_bounds = array<i64: 1>, scalar_prefetch = 0 : i64, scratch_operands = 0 : i64, tpu.core_type = #tpu.core_type<tc>, window_params = [{transform_indices = @transform_0, window_bounds = array<i64: 16, 128>}, {transform_indices = @transform_1, window_bounds = array<i64: 1, 1>}, {transform_indices = @transform_2, window_bounds = array<i64: 1, 128>}]} {
    %c0 = arith.constant 0 : index
    %c0_0 = arith.constant 0 : index
    %0 = vector.load %arg1[%c0, %c0_0] : memref<16x128xf32, #tpu.memory_space<vmem>>, vector<16x128xf32>
    %cst = arith.constant dense<0.000000e+00> : vector<128xf32>
    %1 = vector.multi_reduction <add>, %0, %cst [0] : vector<16x128xf32> to vector<128xf32>
    %2 = vector.shape_cast %1 : vector<128xf32> to vector<1x128xf32>
    %c0_1 = arith.constant 0 : index
    %c0_2 = arith.constant 0 : index
    %3 = memref.load %arg2[%c0_1, %c0_2] : memref<1x1xf32, #tpu.memory_space<smem>>
    %4 = vector.broadcast %3 : f32 to vector<1x128xf32>
    %5 = arith.addf %2, %4 : vector<1x128xf32>
    %c0_3 = arith.constant 0 : index
    %c0_4 = arith.constant 0 : index
    %6 = vector.load %arg3[%c0_3, %c0_4] : memref<1x128xf32, #tpu.memory_space<vmem>>, vector<1x128xf32>
    tpu.vector_store %arg3[%c0_3, %c0_4], %5 {strides = array<i32>} : memref<1x128xf32, #tpu.memory_space<vmem>>, vector<1x128xf32>,
    return
  }
  func.func @transform_0(%arg0: i32) -> (i32, i32) {
    %c0_i32 = arith.constant 0 : i32
    %c0_i32_0 = arith.constant 0 : i32
    return %c0_i32, %arg0 : i32, i32
  }
  func.func @transform_1(%arg0: i32) -> (i32, i32) {
    %c0_i32 = arith.constant 0 : i32
    %c0_i32_0 = arith.constant 0 : i32
    %c0_i32_1 = arith.constant 0 : i32
    return %c0_i32, %c0_i32_0 : i32, i32
  }
  func.func @transform_2(%arg0: i32) -> (i32, i32) {
    %c0_i32 = arith.constant 0 : i32
    %c0_i32_0 = arith.constant 0 : i32
    return %c0_i32, %arg0 : i32, i32
  }
}

</mosaic_0001>

<bundles_post_ra>
// kernel: tpu_custom_call.1
= control target key start
LH: loop header
LB: loop body
LE: loop exit
PB: predicated region body
PF: predicated region fallthrough
CT: control target
= control target key end

     0   :  { %8 = vsyncpa [#allocation4], 0  ;;  %s153_s0 = inlined_call_operand.hbm [shape: f32[16,128], index: 0, kind: input, shape index: {}]   ;;  %s154_s1 = inlined_call_operand.<no memory space> [shape: f32[1,1], index: 1, kind: input, shape index: {}]   ;;  %s155_s2 = inlined_call_operand.hbm [shape: f32[1,128], index: 2, kind: output, shape index: {}]  }
   0x1   :  { %9 = vsyncpa [#allocation5], 0  ;;  %s107_s9 = smov [#allocation3]   ;;  %s59_s13 = scalar_lea.hbm %s153_s0, 256 }
   0x2   :  { %s15_s10 = sshll.u32 %s107_s9, 4  ;;  %p60_p0 = scmp.ne.s32.totalorder %s153_s0, %s59_s13  ;;  %s16_s10 = int_to_ptr.vmem [resolvable:$true] %s15_s10 }
   0x3   :  { %p63_p1 = scmp.lt.u32.totalorder %s59_s13, %s153_s0 }
   0x5   :  { %p65_p2 = pnand %p63_p1, %p60_p0 }
   0x7   :  { %68 = shalt.err (!%p65_p2)
}
   0x8   :  { %s69_s18 = scalar_lea.vmem %s16_s10, 256  ;;  %p74_p4 = scmp.lt.s32.totalorder %s16_s10, %s16_s10 }
   0x9   :  { %p70_p3 = scmp.ne.s32.totalorder %s16_s10, %s69_s18  ;;  %p75_p5 = scmp.lt.s32.totalorder %s69_s18, %s69_s18 }
   0xb   :  { %p76_p6 = por %p75_p5, %p74_p4 }
   0xd   :  { %p77_p7 = pnand %p76_p6, %p70_p3 }
   0xf   :  { %80 = shalt.err (!%p77_p7)
}
  0x10   :  { %s108_s19 = smov 128   ;;  %s109_s20 = smov 8  }
  0x11   :  { %21 = dma.hbm_to_vmem [thread:$0]  %s153_s0, 256, %s16_s10, [#allocation4], %s108_s19, %s108_s19, %s109_s20  }
  0x12   :  { %103 = dma.done.wait [#allocation4], 256  }
  0x13   :  { %104 = vsyncadd [#allocation4], 4294967040  ;;  %v27_v0 = vld [vmem:[#allocation3] sm:$0xff]  ;;  %v28_v1 = vld [vmem:[#allocation3 + $0x8] sm:$0xff]  ;;  %v37_v8 = vstv %s154_s1  ;;  %s110_s25 = smov [#allocation6]  }
  0x14   :  { %v29_v2 = vadd.f32 %v28_v1, %v27_v0  ;;  %s46_s26 = sshll.u32 %s110_s25, 4  ;;  %s47_s26 = int_to_ptr.vmem [resolvable:$true] %s46_s26 }
  0x15   :  { %s81_s0 = scalar_lea.vmem %s47_s26, 16  ;;  %s85_s27 = scalar_lea.vmem %s47_s26, 32 }
  0x16   :  { %v30_v3 = vrot.slane %v29_v2, 4  ;;  %p82_p8 = scmp.ne.s32.totalorder %s47_s26, %s81_s0  ;;  %p86_p9 = scmp.lt.s32.totalorder %s47_s26, %s47_s26 }
  0x17   :  { %p87_p10 = scmp.lt.s32.totalorder %s85_s27, %s81_s0 }
  0x18   :  { %v31_v4 = vadd.f32 %v30_v3, %v29_v2 }
  0x19   :  { %p88_p11 = por %p87_p10, %p86_p9 }
  0x1a   :  { %v32_v5 = vrot.slane %v31_v4, 2 }
  0x1b   :  { %p89_p12 = pnand %p88_p11, %p82_p8 }
  0x1c   :  { %v33_v6 = vadd.f32 %v32_v5, %v31_v4 }
  0x1e   :  { %v34_v7 = vrot.slane %v33_v6, 1 }
  0x20   :  { %v35_v9 = vadd.f32 %v34_v7, %v33_v6 }
  0x22   :  { %v38_v10 = vadd.f32 %v37_v8, %v35_v9 }
  0x24   :  { %39 = vst [vmem:[#allocation6] sm:$0x1] %v38_v10 }
  0x25   :  { %92 = shalt.err (!%p89_p12)
}
  0x26   :  { %s93_s30 = scalar_lea.hbm %s155_s2, 16 }
  0x27   :  { %p94_p13 = scmp.ne.s32.totalorder %s155_s2, %s93_s30  ;;  %p97_p0 = scmp.lt.u32.totalorder %s93_s30, %s155_s2 }
  0x29   :  { %p99_p1 = pnand %p97_p0, %p94_p13 }
  0x2b   :  { %102 = shalt.err (!%p99_p1)
}
  0x2c   :  { %49 = dma.vmem_to_hbm [thread:$0]  %s47_s26, 16, %s155_s2, [#allocation5]  }
  0x2d   :  { %105 = dma.done.wait [#allocation5], 16  }
  0x2e   :  { %106 = vsyncadd [#allocation5], 4294967280 }
  0x2f   :  { %53 = vsyncpa [#allocation4], 1 }
  0x30   :  { %54 = vsyncpa [#allocation5], 1 }

</bundles_post_ra>
